<compile_context>
chip_gen: v7x
topology: tpu7x:2x2x1
jax: 0.10.0
libtpu: 0.0.40
codegen_flags: <defaults>
</compile_context>

<pallas_src>
import functools

import jax
import jax.numpy as jnp
from jax.experimental import pallas as pl
from jax.experimental.pallas import tpu as pltpu

COEF = 0.97            # PreEmphasis(coef=0.97): flipped_filter = [-0.97, 1.0]

_SUB = 8               # f32 sublane count
_LANE = 128            # lane count
_T_TILE_MAX = 16 * 1024        # lanes per time tile (multiple of 128)
_ROWS_MAX = 1024               # cap on rows per block
_BLOCK_ELEMS_MAX = 512 * 1024  # ~2 MiB f32 per block buffer (x4 live with double buffering)
_SMALL_BYTES = 1 << 20         # below this, the pure-JAX fused expression is faster


def _preemphasis_kernel(x_ref, o_ref, carry_ref, *, coef):
    """x_ref/o_ref: (rows, t_tile) f32 tiles; carry_ref: (rows, 1) f32 VMEM scratch."""
    j = pl.program_id(1)                       # time-tile index (sequential, "arbitrary")
    x = x_ref[...]
    prev = pltpu.roll(x, shift=1, axis=1)      # prev[:, t] = x[:, t-1]; lane 0 wraps (fixed below)
    # Previous sample for lane 0 of this tile: reflect pad (x[:, 1]) on the first tile, otherwise
    # the last sample of the previous time tile, carried across the grid in VMEM scratch.
    prev0 = jnp.where(j == 0, x[:, 1:2], carry_ref[...])
    carry_ref[...] = x[:, -1:]                 # hand our last sample to the next time tile
    o_ref[...] = x - coef * prev               # full-width, lane-dense unmasked store
    o_ref[:, 0:1] = x[:, 0:1] - coef * prev0   # 1-lane patch of the wrapped column


def _round_up(v, m):
    return (v + m - 1) // m * m


def _choose_tiles(B, T, t_tile=None):
    """Pick (rows, t_tile) so each buffer is <= ~2 MiB and no pad/slice is needed for ragged B."""
    if t_tile is None:
        t_tile = T if T <= _T_TILE_MAX else _T_TILE_MAX   # 128-multiple; last tile may be partial
    rows_budget = max(_SUB, min(_ROWS_MAX, (_BLOCK_ELEMS_MAX // max(t_tile, 1)) // _SUB * _SUB))
    b8 = _round_up(B, _SUB)
    if B % _SUB != 0 and B <= rows_budget:
        return B, t_tile        # full-dim row block: always layout-legal, no padding needed
    rows = min(b8, rows_budget)
    if b8 >= 2 * _SUB:          # keep >= 2 row blocks so both v7x TensorCores get work
        rows = min(rows, max(_SUB, (b8 // 2) // _SUB * _SUB))
    return rows, t_tile


def preemphasis(x: jax.Array, coef: float = COEF, *,
                force_pallas: bool = False, t_tile: int | None = None) -> jax.Array:
    """x: (B, T) float waveform batch -> (B, T) pre-emphasized waveform (same dtype)."""
    B, T = x.shape
    if T < 2:
        raise ValueError("PreEmphasis needs T >= 2 (reflect pad of width 1).")
    orig_dtype = x.dtype
    xf = x.astype(jnp.float32)   # compute in f32 (matches the PyTorch FloatTensor filter)

    if not force_pallas and xf.size * 4 < _SMALL_BYTES:
        # Launch + pipeline prologue dwarfs the work at this size; XLA fuses this to one pass.
        prev = jnp.concatenate([xf[:, 1:2], xf[:, :-1]], axis=1)
        return (xf - coef * prev).astype(orig_dtype)

    rows, tt = _choose_tiles(B, T, t_tile)     # tt must be a multiple of 128 or equal to T
    grid = (pl.cdiv(B, rows), pl.cdiv(T, tt))

    out = pl.pallas_call(
        functools.partial(_preemphasis_kernel, coef=float(coef)),
        out_shape=jax.ShapeDtypeStruct((B, T), jnp.float32),
        grid_spec=pltpu.PrefetchScalarGridSpec(
            num_scalar_prefetch=0,
            grid=grid,
            in_specs=[pl.BlockSpec((rows, tt), lambda i, j: (i, j))],
            out_specs=pl.BlockSpec((rows, tt), lambda i, j: (i, j)),
            scratch_shapes=[pltpu.VMEM((rows, 1), jnp.float32)],
        ),
        compiler_params=pltpu.CompilerParams(
            dimension_semantics=("parallel", "arbitrary"),
        ),
        cost_estimate=pl.CostEstimate(
            flops=2 * B * T,
            bytes_accessed=8 * B * T,
            transcendentals=0,
        ),
    )(xf)
    return out if out.dtype == orig_dtype else out.astype(orig_dtype)


def preemphasis_ref(x: jax.Array, coef: float = COEF) -> jax.Array:
    """Pure-JAX reference mirroring the PyTorch module semantics."""
    prev = jnp.concatenate([x[:, 1:2], x[:, :-1]], axis=1)  # reflect pad (1, 0)
    return x - coef * prev


if __name__ == "__main__":
    key = jax.random.PRNGKey(0)
    k1, k2 = jax.random.split(key)

    # 1) Module-typical toy shape; force the Pallas path (default would take the fused fast path).
    x1 = jax.random.normal(k1, (2, 128), dtype=jnp.float32)
    y1 = preemphasis(x1, force_pallas=True)
    jax.block_until_ready(y1)
    r1 = preemphasis_ref(x1)
    assert y1.shape == x1.shape and y1.dtype == jnp.float32
    assert jnp.allclose(y1, r1, atol=1e-5, rtol=1e-5), float(jnp.max(jnp.abs(y1 - r1)))

    # 2) Multi-block case: 2 row blocks x 4 time tiles — exercises the cross-tile carry and the
    #    "parallel" row axis.  (t_tile override is only for testing; production sizing is auto.)
    x2 = jax.random.normal(k2, (16, 512), dtype=jnp.float32)
    y2 = preemphasis(x2, force_pallas=True, t_tile=128)
    jax.block_until_ready(y2)
    r2 = preemphasis_ref(x2)
    assert jnp.allclose(y2, r2, atol=1e-5, rtol=1e-5), float(jnp.max(jnp.abs(y2 - r2)))

    # 3) Small-input fast path (pure JAX) agrees as well.
    y3 = preemphasis(x1)
    jax.block_until_ready(y3)
    assert jnp.allclose(y3, r1, atol=1e-5, rtol=1e-5)

    print("KERNEL_OK")
</pallas_src>

<mosaic_0001>
module attributes {stable_mosaic.version = 11 : i64} {
  func.func @_preemphasis_kernel(%arg0: i32, %arg1: i32, %arg2: memref<2x128xf32, #tpu.memory_space<vmem>>, %arg3: memref<2x128xf32, #tpu.memory_space<vmem>>, %arg4: memref<2x1xf32, #tpu.memory_space<vmem>>) attributes {dimension_semantics = [#tpu.dimension_semantics<parallel>, #tpu.dimension_semantics<arbitrary>], iteration_bounds = array<i64: 1, 1>, scalar_prefetch = 0 : i64, scratch_operands = 1 : i64, tpu.core_type = #tpu.core_type<tc>, window_params = [{transform_indices = @transform_0, window_bounds = array<i64: 2, 128>}, {transform_indices = @transform_1, window_bounds = array<i64: 2, 128>}]} {
    %c0 = arith.constant 0 : index
    %c0_0 = arith.constant 0 : index
    %0 = vector.load %arg2[%c0, %c0_0] : memref<2x128xf32, #tpu.memory_space<vmem>>, vector<2x128xf32>
    %c1_i32 = arith.constant 1 : i32
    %1 = tpu.dynamic_rotate %0 by %c1_i32 dim 1 : vector<2x128xf32>, i32 -> vector<2x128xf32>
    %c0_i32 = arith.constant 0 : i32
    %2 = arith.cmpi eq, %arg1, %c0_i32 : i32
    %3 = vector.extract_strided_slice %0 {offsets = [0, 1], sizes = [2, 1], strides = [1, 1]} : vector<2x128xf32> to vector<2x1xf32>
    %c0_1 = arith.constant 0 : index
    %c0_2 = arith.constant 0 : index
    %4 = vector.load %arg4[%c0_1, %c0_2] : memref<2x1xf32, #tpu.memory_space<vmem>>, vector<2x1xf32>
    %5 = arith.select %2, %3, %4 : vector<2x1xf32>
    %6 = vector.extract_strided_slice %0 {offsets = [0, 127], sizes = [2, 1], strides = [1, 1]} : vector<2x128xf32> to vector<2x1xf32>
    %c0_3 = arith.constant 0 : index
    %c0_4 = arith.constant 0 : index
    %7 = vector.load %arg4[%c0_3, %c0_4] : memref<2x1xf32, #tpu.memory_space<vmem>>, vector<2x1xf32>
    tpu.vector_store %arg4[%c0_3, %c0_4], %6 {strides = array<i32>} : memref<2x1xf32, #tpu.memory_space<vmem>>, vector<2x1xf32>,
    %cst = arith.constant 9.700000e-01 : f32
    %8 = vector.broadcast %cst : f32 to vector<2x128xf32>
    %9 = arith.mulf %8, %1 : vector<2x128xf32>
    %10 = arith.subf %0, %9 : vector<2x128xf32>
    %c0_5 = arith.constant 0 : index
    %c0_6 = arith.constant 0 : index
    %11 = vector.load %arg3[%c0_5, %c0_6] : memref<2x128xf32, #tpu.memory_space<vmem>>, vector<2x128xf32>
    tpu.vector_store %arg3[%c0_5, %c0_6], %10 {strides = array<i32>} : memref<2x128xf32, #tpu.memory_space<vmem>>, vector<2x128xf32>,
    %12 = vector.extract_strided_slice %0 {offsets = [0, 0], sizes = [2, 1], strides = [1, 1]} : vector<2x128xf32> to vector<2x1xf32>
    %cst_7 = arith.constant 9.700000e-01 : f32
    %13 = vector.broadcast %cst_7 : f32 to vector<2x1xf32>
    %14 = arith.mulf %13, %5 : vector<2x1xf32>
    %15 = arith.subf %12, %14 : vector<2x1xf32>
    %c0_8 = arith.constant 0 : index
    %c0_9 = arith.constant 0 : index
    %16 = vector.load %arg3[%c0_8, %c0_9] : memref<2x128xf32, #tpu.memory_space<vmem>>, vector<2x1xf32>
    tpu.vector_store %arg3[%c0_8, %c0_9], %15 {strides = array<i32>} : memref<2x128xf32, #tpu.memory_space<vmem>>, vector<2x1xf32>,
    return
  }
  func.func @transform_0(%arg0: i32, %arg1: i32) -> (i32, i32) {
    %c0_i32 = arith.constant 0 : i32
    return %arg0, %arg1 : i32, i32
  }
  func.func @transform_1(%arg0: i32, %arg1: i32) -> (i32, i32) {
    %c0_i32 = arith.constant 0 : i32
    return %arg0, %arg1 : i32, i32
  }
}

</mosaic_0001>

<bundles_post_ra>
// kernel: tpu_custom_call.1
= control target key start
LH: loop header
LB: loop body
LE: loop exit
PB: predicated region body
PF: predicated region fallthrough
CT: control target
= control target key end

     0   :  { %6 = vsyncpa [#allocation4], 0  ;;  %s155_s0 = inlined_call_operand.hbm [shape: f32[2,128], index: 0, kind: input, shape index: {}]   ;;  %s156_s1 = inlined_call_operand.hbm [shape: f32[2,128], index: 1, kind: output, shape index: {}]  }
   0x1   :  { %7 = vsyncpa [#allocation5], 0  ;;  %s117_s6 = smov [#allocation3]   ;;  %s69_s10 = scalar_lea.hbm %s155_s0, 32 }
   0x2   :  { %s14_s7 = sshll.u32 %s117_s6, 4  ;;  %p70_p0 = scmp.ne.s32.totalorder %s155_s0, %s69_s10  ;;  %s15_s7 = int_to_ptr.vmem [resolvable:$true] %s14_s7 }
   0x3   :  { %p73_p1 = scmp.lt.u32.totalorder %s69_s10, %s155_s0 }
   0x5   :  { %p75_p2 = pnand %p73_p1, %p70_p0 }
   0x7   :  { %78 = shalt.err (!%p75_p2)
}
   0x8   :  { %s79_s15 = scalar_lea.vmem %s15_s7, 32  ;;  %p84_p4 = scmp.lt.s32.totalorder %s15_s7, %s15_s7 }
   0x9   :  { %p80_p3 = scmp.ne.s32.totalorder %s15_s7, %s79_s15  ;;  %p85_p5 = scmp.lt.s32.totalorder %s79_s15, %s79_s15 }
   0xb   :  { %p86_p6 = por %p85_p5, %p84_p4 }
   0xd   :  { %p87_p7 = pnand %p86_p6, %p80_p3 }
   0xf   :  { %90 = shalt.err (!%p87_p7)
}
  0x10   :  { %17 = dma.hbm_to_vmem [thread:$0]  %s155_s0, 32, %s15_s7, [#allocation4]  }
  0x11   :  { %113 = dma.done.wait [#allocation4], 32  }
  0x12   :  { %114 = vsyncadd [#allocation4], 4294967264  ;;  %v21_v0 = vld [vmem:[#allocation3] sm:$0x3]  ;;  %s118_s18 = smov 1   ;;  %s119_s19 = smov 127  }
  0x13   :  { %22 = vrot.lane.b32.xlu0 %v21_v0, %s118_s18  ;;  %v43_v1 = vmul.f32 0.97, %v21_v0  ;;  %35 = vrot.lane.b32.xlu1 %v21_v0, %s118_s18  ;;  %vm38_vm0 = vcmask 1024   ;;  %s120_s20 = smov [#allocation6]  }
  0x14   :  { %s56_s21 = sshll.u32 %s120_s20, 4  ;;  %s57_s21 = int_to_ptr.vmem [resolvable:$true] %s56_s21 }
  0x15   :  { %s91_s0 = scalar_lea.vmem %s57_s21, 32  ;;  %p96_p9 = scmp.lt.s32.totalorder %s57_s21, %s57_s21 }
  0x16   :  { %p92_p8 = scmp.ne.s32.totalorder %s57_s21, %s91_s0  ;;  %p97_p10 = scmp.lt.s32.totalorder %s91_s0, %s91_s0 }
  0x17   :  { %45 = vrot.lane.b32.xlu0 %v43_v1, %s119_s19 }
  0x18   :  { %p98_p11 = por %p97_p10, %p96_p9 }
  0x1a   :  { %p99_p12 = pnand %p98_p11, %p92_p8 }
  0x85   :  { %v23_v2 = vpop.permute.xlu0 %22  ;;  %v36_v3 = vpop.permute.xlu1 %35 }
  0x86   :  { %v40_v4 = vmul.f32 0.97, %v23_v2 }
  0x88   :  { %v41_v5 = vsub.f32 %v21_v0, %v40_v4 }
  0x89   :  { %v46_v6 = vpop.permute.xlu0 %45 }
  0x8a   :  { %42 = vst [vmem:[#allocation6] sm:$0x3] %v41_v5  ;;  %v48_v7 = vsub.f32 %v21_v0, %v46_v6 }
  0x8c   :  { %49 = vst.msk [vmem:[#allocation6] sm:$0x3] %vm38_vm0, %v48_v7 }
  0x8d   :  { %102 = shalt.err (!%p99_p12)
}
  0x8e   :  { %s103_s24 = scalar_lea.hbm %s156_s1, 32 }
  0x8f   :  { %p104_p13 = scmp.ne.s32.totalorder %s156_s1, %s103_s24  ;;  %p107_p0 = scmp.lt.u32.totalorder %s103_s24, %s156_s1 }
  0x91   :  { %p109_p1 = pnand %p107_p0, %p104_p13 }
  0x93   :  { %112 = shalt.err (!%p109_p1)
}
  0x94   :  { %59 = dma.vmem_to_hbm [thread:$0]  %s57_s21, 32, %s156_s1, [#allocation5]  }
  0x95   :  { %115 = dma.done.wait [#allocation5], 32  }
  0x96   :  { %116 = vsyncadd [#allocation5], 4294967264 }
  0x97   :  { %63 = vsyncpa [#allocation4], 1 }
  0x98   :  { %64 = vsyncpa [#allocation5], 1 }

</bundles_post_ra>
